<compile_context>
chip_gen: v7x
topology: tpu7x:2x2x1
jax: 0.10.0
libtpu: 0.0.40
codegen_flags: <defaults>
</compile_context>

<pallas_src>
import functools

import jax
import jax.numpy as jnp
from jax import lax
from jax.experimental import pallas as pl
from jax.experimental.pallas import tpu as pltpu


def _round_up(x, m):
    return (x + m - 1) // m * m


def _vmem_capacity_bytes():
    try:
        return int(pltpu.get_tpu_info().vmem_capacity_bytes)
    except Exception:
        return 64 * 1024 * 1024   # conservative fallback (v7x physical VMEM)


def _num_tensorcores():
    # Among the targeted generations only v7x has two TensorCores per device;
    # default conservatively to 1 (a size-1 split is just a normal grid).
    try:
        kind = jax.devices()[0].device_kind.lower()
    except Exception:
        return 1
    return 2 if "v7" in kind else 1


def _lal_loss_kernel(other_ref, comp_ref, ones_ref, cr_other_ref,
                     sumsq_comp_ref, cr_comp_ref, out_ref, *,
                     n_rows, tile_rows, tiles_per_split, total_tiles,
                     cr_resident):
    # other_ref:      (TN, D)   VMEM - tile of other-user embeddings (native dtype)
    # comp_ref:       (D, 1)    VMEM - comparable-user embedding column (native dtype)
    # ones_ref:       (D, 1)    VMEM - hoisted f32 ones column (MXU row-reduce RHS)
    # cr_other_ref:   (N_pad,1) or (TN,1) VMEM - other click rates
    # sumsq_comp_ref: (1, 1)    VMEM - hoisted ||comp||^2 (f32)
    # cr_comp_ref:    (1, 1)    VMEM - comparable click rate (f32)
    # out_ref:        (8, 128)  VMEM - per-split partial sum (resident accumulator)
    c = pl.program_id(0)     # TensorCore split ("parallel")
    t = pl.program_id(1)     # reduction step within the split ("arbitrary")
    block = c * tiles_per_split + t

    @pl.when(t == 0)
    def _():
        out_ref[...] = jnp.zeros_like(out_ref)

    other = other_ref[...]                                   # (TN, D) native dtype
    comp_col = comp_ref[...]                                 # (D, 1)  native dtype

    # Row dot-products on the MXU in the native dtype (bf16 goes straight in).
    dot = jnp.dot(other, comp_col,
                  preferred_element_type=jnp.float32)        # (TN, 1)

    # Row squared norms: square in f32 (precision; v5e has no bf16 VALU),
    # reduce on the MXU against the hoisted ones column.
    o32 = other.astype(jnp.float32)
    sumsq_other = jnp.dot(o32 * o32, ones_ref[...],
                          preferred_element_type=jnp.float32)  # (TN, 1)

    # cos = dot / max(||x||*||y||, eps) via a single EUP rsqrt:
    #   rsqrt(max(a^2 b^2, eps^2)) == 1 / max(a*b, eps)  for a, b >= 0.
    eps = jnp.float32(1e-8)
    denom_sq = jnp.maximum(sumsq_other * sumsq_comp_ref[...], eps * eps)
    cos_sim = dot * lax.rsqrt(denom_sq)                      # (TN, 1)

    # Click-rate similarity: 1 - |cr_comp - cr_other|
    if cr_resident:
        start = jnp.minimum(block, total_tiles - 1) * tile_rows
        start = pl.multiple_of(start, 8)
        cr_other = cr_other_ref[pl.ds(start, tile_rows), :]  # (TN, 1)
    else:
        cr_other = cr_other_ref[...]                         # (TN, 1)
    click_sim = 1.0 - jnp.abs(cr_comp_ref[...] - cr_other.astype(jnp.float32))

    resid = jnp.abs(click_sim - cos_sim)                     # (TN, 1)

    # Mask rows past the true N (kept as a select so NaN/Inf in the padded
    # tail never propagates; do NOT fold this into a multiply).
    row = block * tile_rows + lax.broadcasted_iota(jnp.int32, (tile_rows, 1), 0)
    resid = jnp.where(row < n_rows, resid, jnp.float32(0.0))

    # Scalar partial sum per step (XLU reduce rides an otherwise idle slot),
    # accumulated into the resident lane-dense output block.
    out_ref[...] += jnp.sum(resid)


def lal_loss(comparable_user, other_users, comparable_click_rate,
             other_click_rates, previous_iteration_loss_value=0.0,
             batch_size=1, margin=0.0, tile_rows=None):
    """JAX/Pallas equivalent of LaLLoss.forward (batch_size == 1 path).

    comparable_user:       (D,)
    other_users:           (1, N, D)   (squeezed on axis 0, as in torch)
    comparable_click_rate: scalar
    other_click_rates:     (N,)
    tile_rows:             optional cap on the row tile (testing only).
    """
    # TODO(synk): `margin` is accepted but unused, matching the reference's
    # batch_size==1 forward path (it never reads self.margin).
    assert batch_size == 1, "only the batch_size==1 path is defined in the reference"

    others = jnp.squeeze(other_users, axis=0)                 # (N, D), native dtype
    n, d = others.shape
    comp_col = jnp.reshape(comparable_user, (d, 1))           # (D, 1), native dtype
    comp32 = comp_col.astype(jnp.float32)
    sumsq_comp = jnp.sum(comp32 * comp32).reshape(1, 1)       # hoisted ||comp||^2
    cr_comp = jnp.reshape(comparable_click_rate, (1, 1)).astype(jnp.float32)
    ones_col = jnp.ones((d, 1), jnp.float32)                  # hoisted ones column

    # ---- hardware-aware tile sizing ------------------------------------
    itemsize = jnp.dtype(others.dtype).itemsize
    d_pad = _round_up(d, 128)                  # VMEM lane padding
    vmem_cap = _vmem_capacity_bytes()          # 128 MiB v5e/v6e, 64 MiB v7x
    vmem_limit = min(vmem_cap * 3 // 4, 100 * 1024 * 1024)
    budget = vmem_limit // 2                   # headroom for compiler scratch

    # Per-row VMEM cost of the streamed pipeline: double-buffered native tile
    # + two (TN, D_pad) f32 temporaries (cast + square) of the squared-norm
    # path + the streamed click-rate column.
    per_row = d_pad * itemsize * 2 + d_pad * 4 * 2 + 8
    tn = budget // per_row
    tn = min(tn, (8 * 1024 * 1024) // max(d_pad * itemsize, 1))  # <= ~8 MiB/buffer
    if tile_rows is not None:
        tn = min(tn, tile_rows)
    tn = min(tn, _round_up(n, 8))
    tn = max(8, (tn // 8) * 8)

    total_tiles = pl.cdiv(n, tn)
    num_splits = 2 if (_num_tensorcores() >= 2 and total_tiles >= 2) else 1
    tiles_per_split = pl.cdiv(total_tiles, num_splits)

    def data_map(c, t):
        # Clamp so dead (fully masked) trailing steps re-read a valid block.
        b = jnp.minimum(c * tiles_per_split + t, total_tiles - 1)
        return (b, 0)

    # Click rates: fully VMEM-resident when small, else streamed per tile.
    cr_other = jnp.reshape(other_click_rates, (n, 1))
    n_pad = total_tiles * tn
    cr_resident = n_pad * cr_other.dtype.itemsize <= 512 * 1024
    if cr_resident:
        cr_other = jnp.pad(cr_other, ((0, n_pad - n), (0, 0)))
        cr_spec = pl.BlockSpec((n_pad, 1), lambda c, t: (0, 0))
    else:
        cr_spec = pl.BlockSpec((tn, 1), data_map)

    kernel = functools.partial(
        _lal_loss_kernel, n_rows=n, tile_rows=tn,
        tiles_per_split=tiles_per_split, total_tiles=total_tiles,
        cr_resident=cr_resident)

    out = pl.pallas_call(
        kernel,
        out_shape=jax.ShapeDtypeStruct((num_splits * 8, 128), jnp.float32),
        grid_spec=pltpu.PrefetchScalarGridSpec(
            num_scalar_prefetch=0,
            grid=(num_splits, tiles_per_split),
            in_specs=[
                pl.BlockSpec((tn, d), data_map),             # other embeddings
                pl.BlockSpec((d, 1), lambda c, t: (0, 0)),   # comparable embedding
                pl.BlockSpec((d, 1), lambda c, t: (0, 0)),   # ones column (f32)
                cr_spec,                                     # other click rates
                pl.BlockSpec((1, 1), lambda c, t: (0, 0)),   # ||comp||^2 (f32)
                pl.BlockSpec((1, 1), lambda c, t: (0, 0)),   # comparable click rate
            ],
            out_specs=pl.BlockSpec((8, 128), lambda c, t: (c, 0)),
        ),
        compiler_params=pltpu.CompilerParams(
            dimension_semantics=("parallel", "arbitrary"),
            vmem_limit_bytes=int(vmem_limit)),
    )(others, comp_col, ones_col, cr_other, sumsq_comp, cr_comp)

    partials = out[0::8, 0]                                   # (num_splits,)
    total = jnp.sum(partials)
    prev = jnp.asarray(previous_iteration_loss_value, jnp.float32)
    return total / jnp.float32(n) + prev


def _reference(comparable_user, other_users, cr_comp, cr_other, prev=0.0):
    """Pure-JAX reference mirroring the PyTorch semantics."""
    others = jnp.squeeze(other_users, axis=0).astype(jnp.float32)
    comp = comparable_user.astype(jnp.float32)
    eps = 1e-8
    dot = jnp.sum(others * comp[None, :], axis=1)
    n1 = jnp.linalg.norm(others, axis=1)
    n2 = jnp.linalg.norm(comp)
    cos = dot / jnp.maximum(n1 * n2, eps)
    click_sim = 1.0 - jnp.abs(jnp.float32(cr_comp) - cr_other.astype(jnp.float32))
    return jnp.mean(jnp.abs(click_sim - cos)) + prev


if __name__ == "__main__":
    # Case 1: single tile (the module's natural small shape).
    k1, k2, k3, k4 = jax.random.split(jax.random.PRNGKey(0), 4)
    N, D = 8, 32
    comparable_user = jax.random.normal(k1, (D,), dtype=jnp.float32)
    other_users = jax.random.normal(k2, (1, N, D), dtype=jnp.float32)
    comparable_click_rate = jax.random.uniform(k3, (), dtype=jnp.float32)
    other_click_rates = jax.random.uniform(k4, (N,), dtype=jnp.float32)
    prev_loss = 0.25

    out = lal_loss(comparable_user, other_users, comparable_click_rate,
                   other_click_rates, previous_iteration_loss_value=prev_loss,
                   batch_size=1)
    out = jax.block_until_ready(out)
    ref = _reference(comparable_user, other_users, comparable_click_rate,
                     other_click_rates, prev_loss)
    assert jnp.allclose(out, ref, atol=1e-5, rtol=1e-5), (out, ref)

    # Case 2: forces multiple row tiles plus a masked ragged tail
    # (tile_rows is a test-only override of the byte-budgeted tile size).
    k5, k6, k7, k8 = jax.random.split(jax.random.PRNGKey(1), 4)
    N2, D2 = 37, 64
    cu2 = jax.random.normal(k5, (D2,), dtype=jnp.float32)
    ou2 = jax.random.normal(k6, (1, N2, D2), dtype=jnp.float32)
    ccr2 = jax.random.uniform(k7, (), dtype=jnp.float32)
    ocr2 = jax.random.uniform(k8, (N2,), dtype=jnp.float32)

    out2 = lal_loss(cu2, ou2, ccr2, ocr2, previous_iteration_loss_value=0.0,
                    batch_size=1, tile_rows=16)
    out2 = jax.block_until_ready(out2)
    ref2 = _reference(cu2, ou2, ccr2, ocr2, 0.0)
    assert jnp.allclose(out2, ref2, atol=1e-5, rtol=1e-5), (out2, ref2)

    print("KERNEL_OK")
</pallas_src>

<mosaic_0001>
module attributes {stable_mosaic.version = 11 : i64} {
  func.func @_lal_loss_kernel(%arg0: i32, %arg1: i32, %arg2: memref<8x32xf32, #tpu.memory_space<vmem>>, %arg3: memref<32x1xf32, #tpu.memory_space<vmem>>, %arg4: memref<32x1xf32, #tpu.memory_space<vmem>>, %arg5: memref<8x1xf32, #tpu.memory_space<vmem>>, %arg6: memref<1x1xf32, #tpu.memory_space<vmem>>, %arg7: memref<1x1xf32, #tpu.memory_space<vmem>>, %arg8: memref<8x128xf32, #tpu.memory_space<vmem>>) attributes {dimension_semantics = [#tpu.dimension_semantics<parallel>, #tpu.dimension_semantics<arbitrary>], iteration_bounds = array<i64: 1, 1>, scalar_prefetch = 0 : i64, scratch_operands = 0 : i64, tpu.core_type = #tpu.core_type<tc>, window_params = [{transform_indices = @transform_0, window_bounds = array<i64: 8, 32>}, {pipeline_mode = #tpu.pipeline_mode<synchronous>, transform_indices = @transform_1, window_bounds = array<i64: 32, 1>}, {pipeline_mode = #tpu.pipeline_mode<synchronous>, transform_indices = @transform_2, window_bounds = array<i64: 32, 1>}, {pipeline_mode = #tpu.pipeline_mode<synchronous>, transform_indices = @transform_3, window_bounds = array<i64: 8, 1>}, {pipeline_mode = #tpu.pipeline_mode<synchronous>, transform_indices = @transform_4, window_bounds = array<i64: 1, 1>}, {pipeline_mode = #tpu.pipeline_mode<synchronous>, transform_indices = @transform_5, window_bounds = array<i64: 1, 1>}, {transform_indices = @transform_6, window_bounds = array<i64: 8, 128>}]} {
    %c1_i32 = arith.constant 1 : i32
    %0 = arith.muli %arg0, %c1_i32 : i32
    %1 = arith.addi %0, %arg1 : i32
    %c0_i32 = arith.constant 0 : i32
    %2 = arith.cmpi eq, %arg1, %c0_i32 : i32
    %3 = arith.extui %2 : i1 to i32
    %c0_i32_0 = arith.constant 0 : i32
    %4 = arith.cmpi ne, %3, %c0_i32_0 : i32
    scf.if %4 {
      %cst_24 = arith.constant 0.000000e+00 : f32
      %48 = vector.broadcast %cst_24 : f32 to vector<8x128xf32>
      %c0_25 = arith.constant 0 : index
      %c0_26 = arith.constant 0 : index
      %49 = vector.load %arg8[%c0_25, %c0_26] : memref<8x128xf32, #tpu.memory_space<vmem>>, vector<8x128xf32>
      tpu.vector_store %arg8[%c0_25, %c0_26], %48 {strides = array<i32>} : memref<8x128xf32, #tpu.memory_space<vmem>>, vector<8x128xf32>,
    } else {
    }
    %c0 = arith.constant 0 : index
    %c0_1 = arith.constant 0 : index
    %5 = vector.load %arg2[%c0, %c0_1] : memref<8x32xf32, #tpu.memory_space<vmem>>, vector<8x32xf32>
    %c0_2 = arith.constant 0 : index
    %c0_3 = arith.constant 0 : index
    %6 = vector.load %arg3[%c0_2, %c0_3] : memref<32x1xf32, #tpu.memory_space<vmem>>, vector<32x1xf32>
    %cst = arith.constant dense<0.000000e+00> : vector<8x1xf32>
    %7 = tpu.matmul %5, %6, %cst {dimension_numbers = #tpu.dot_dimension_numbers<[1], [0], [0], [1], [0, 0, 1, 1], [], []>} : vector<8x32xf32>, vector<32x1xf32>, vector<8x1xf32> -> vector<8x1xf32>
    %8 = arith.mulf %5, %5 : vector<8x32xf32>
    %c0_4 = arith.constant 0 : index
    %c0_5 = arith.constant 0 : index
    %9 = vector.load %arg4[%c0_4, %c0_5] : memref<32x1xf32, #tpu.memory_space<vmem>>, vector<32x1xf32>
    %cst_6 = arith.constant dense<0.000000e+00> : vector<8x1xf32>
    %10 = tpu.matmul %8, %9, %cst_6 {dimension_numbers = #tpu.dot_dimension_numbers<[1], [0], [0], [1], [0, 0, 1, 1], [], []>} : vector<8x32xf32>, vector<32x1xf32>, vector<8x1xf32> -> vector<8x1xf32>
    %c0_7 = arith.constant 0 : index
    %c0_8 = arith.constant 0 : index
    %11 = vector.load %arg6[%c0_7, %c0_8] : memref<1x1xf32, #tpu.memory_space<vmem>>, vector<1x1xf32>
    %12 = vector.broadcast %11 : vector<1x1xf32> to vector<8x1xf32>
    %13 = arith.mulf %10, %12 : vector<8x1xf32>
    %cst_9 = arith.constant 9.99999993E-9 : f32
    %cst_10 = arith.constant 9.99999993E-9 : f32
    %14 = arith.mulf %cst_9, %cst_10 : f32
    %15 = vector.broadcast %14 : f32 to vector<8x1xf32>
    %16 = arith.maximumf %13, %15 : vector<8x1xf32>
    %17 = math.rsqrt %16 : vector<8x1xf32>
    %18 = arith.mulf %7, %17 : vector<8x1xf32>
    %c0_i32_11 = arith.constant 0 : i32
    %19 = arith.minsi %1, %c0_i32_11 : i32
    %c8_i32 = arith.constant 8 : i32
    %20 = arith.muli %19, %c8_i32 : i32
    %21 = tpu.assume_multiple %20, 8 : i32
    %22 = arith.index_cast %21 : i32 to index
    %c0_12 = arith.constant 0 : index
    %23 = vector.load %arg5[%22, %c0_12] : memref<8x1xf32, #tpu.memory_space<vmem>>, vector<8x1xf32>
    %c0_13 = arith.constant 0 : index
    %c0_14 = arith.constant 0 : index
    %24 = vector.load %arg7[%c0_13, %c0_14] : memref<1x1xf32, #tpu.memory_space<vmem>>, vector<1x1xf32>
    %25 = vector.broadcast %24 : vector<1x1xf32> to vector<8x1xf32>
    %26 = arith.subf %25, %23 : vector<8x1xf32>
    %27 = math.absf %26 : vector<8x1xf32>
    %cst_15 = arith.constant 1.000000e+00 : f32
    %28 = vector.broadcast %cst_15 : f32 to vector<8x1xf32>
    %29 = arith.subf %28, %27 : vector<8x1xf32>
    %30 = arith.subf %29, %18 : vector<8x1xf32>
    %31 = math.absf %30 : vector<8x1xf32>
    %c8_i32_16 = arith.constant 8 : i32
    %32 = arith.muli %1, %c8_i32_16 : i32
    %33 = tpu.iota {dimensions = array<i32: 0>} : vector<8x1xi32>
    %34 = vector.broadcast %32 : i32 to vector<8x1xi32>
    %35 = arith.addi %34, %33 : vector<8x1xi32>
    %c8_i32_17 = arith.constant 8 : i32
    %36 = vector.broadcast %c8_i32_17 : i32 to vector<8x1xi32>
    %37 = arith.cmpi slt, %35, %36 : vector<8x1xi32>
    %cst_18 = arith.constant 0.000000e+00 : f32
    %38 = vector.broadcast %cst_18 : f32 to vector<8x1xf32>
    %39 = arith.select %37, %31, %38 : vector<8x1xi1>, vector<8x1xf32>
    %c0_19 = arith.constant 0 : index
    %c0_20 = arith.constant 0 : index
    %40 = vector.load %arg8[%c0_19, %c0_20] : memref<8x128xf32, #tpu.memory_space<vmem>>, vector<8x128xf32>
    %41 = vector.shape_cast %39 : vector<8x1xf32> to vector<1x8x1xf32>
    %cst_21 = arith.constant dense<0.000000e+00> : vector<1xf32>
    %42 = vector.multi_reduction <add>, %41, %cst_21 [1, 2] : vector<1x8x1xf32> to vector<1xf32>
    %43 = vector.shape_cast %42 : vector<1xf32> to vector<1x1x1xf32>
    %44 = vector.extract %43[0, 0, 0] : f32 from vector<1x1x1xf32>
    %45 = vector.broadcast %44 : f32 to vector<8x128xf32>
    %46 = arith.addf %40, %45 : vector<8x128xf32>
    %c0_22 = arith.constant 0 : index
    %c0_23 = arith.constant 0 : index
    %47 = vector.load %arg8[%c0_22, %c0_23] : memref<8x128xf32, #tpu.memory_space<vmem>>, vector<8x128xf32>
    tpu.vector_store %arg8[%c0_22, %c0_23], %46 {strides = array<i32>} : memref<8x128xf32, #tpu.memory_space<vmem>>, vector<8x128xf32>,
    return
  }
  func.func @transform_0(%arg0: i32, %arg1: i32) -> (i32, i32) {
    %c1_i32 = arith.constant 1 : i32
    %0 = arith.muli %arg0, %c1_i32 : i32
    %1 = arith.addi %0, %arg1 : i32
    %c0_i32 = arith.constant 0 : i32
    %2 = arith.minsi %1, %c0_i32 : i32
    %c0_i32_0 = arith.constant 0 : i32
    %c0_i32_1 = arith.constant 0 : i32
    return %2, %c0_i32_0 : i32, i32
  }
  func.func @transform_1(%arg0: i32, %arg1: i32) -> (i32, i32) {
    %c0_i32 = arith.constant 0 : i32
    %c0_i32_0 = arith.constant 0 : i32
    %c0_i32_1 = arith.constant 0 : i32
    return %c0_i32, %c0_i32_0 : i32, i32
  }
  func.func @transform_2(%arg0: i32, %arg1: i32) -> (i32, i32) {
    %c0_i32 = arith.constant 0 : i32
    %c0_i32_0 = arith.constant 0 : i32
    %c0_i32_1 = arith.constant 0 : i32
    return %c0_i32, %c0_i32_0 : i32, i32
  }
  func.func @transform_3(%arg0: i32, %arg1: i32) -> (i32, i32) {
    %c0_i32 = arith.constant 0 : i32
    %c0_i32_0 = arith.constant 0 : i32
    %c0_i32_1 = arith.constant 0 : i32
    return %c0_i32, %c0_i32_0 : i32, i32
  }
  func.func @transform_4(%arg0: i32, %arg1: i32) -> (i32, i32) {
    %c0_i32 = arith.constant 0 : i32
    %c0_i32_0 = arith.constant 0 : i32
    %c0_i32_1 = arith.constant 0 : i32
    return %c0_i32, %c0_i32_0 : i32, i32
  }
  func.func @transform_5(%arg0: i32, %arg1: i32) -> (i32, i32) {
    %c0_i32 = arith.constant 0 : i32
    %c0_i32_0 = arith.constant 0 : i32
    %c0_i32_1 = arith.constant 0 : i32
    return %c0_i32, %c0_i32_0 : i32, i32
  }
  func.func @transform_6(%arg0: i32, %arg1: i32) -> (i32, i32) {
    %c0_i32 = arith.constant 0 : i32
    %c0_i32_0 = arith.constant 0 : i32
    return %arg0, %c0_i32 : i32, i32
  }
}

</mosaic_0001>

<bundles_post_ra>
// kernel: tpu_custom_call.1
= control target key start
LH: loop header
LB: loop body
LE: loop exit
PB: predicated region body
PF: predicated region fallthrough
CT: control target
= control target key end

     0   :  { %s457_s0 = inlined_call_operand.vmem [shape: f32[8,32], index: 0, kind: input, shape index: {}]   ;;  %s458_s1 = inlined_call_operand.vmem [shape: f32[32,1], index: 1, kind: input, shape index: {}]   ;;  %s459_s2 = inlined_call_operand.vmem [shape: f32[32,1], index: 2, kind: input, shape index: {}]   ;;  %s460_s3 = inlined_call_operand.vmem [shape: f32[8,1], index: 3, kind: input, shape index: {}]   ;;  %s461_s4 = inlined_call_operand.<no memory space> [shape: f32[1,1], index: 4, kind: input, shape index: {}]   ;;  %s462_s6 = inlined_call_operand.hbm [shape: f32[8,128], index: 6, kind: output, shape index: {}]   ;;  %s463_s5 = inlined_call_operand.<no memory space> [shape: f32[1,1], index: 5, kind: input, shape index: {}]  }
   0x1   :  { %v11_v0 = vstv %s461_s4  ;;  %v13_v1 = vstv %s463_s5 }
   0x2   :  { %12 = vst [vmem:[#allocation2] sm:$0x1] %v11_v0  ;;  %14 = vst [vmem:[#allocation3] sm:$0x1] %v13_v1 }
   0x3   :  { %v141_v2 = vld [vmem:[%s459_s2] sm:$0xff]  ;;  %v142_v3 = vld [vmem:[%s459_s2 + $0x8] sm:$0xff]  ;;  %v143_v4 = vld [vmem:[%s459_s2 + $0x10] sm:$0xff]  ;;  %v370_v5 = vmov 0.0|0.0   ;;  %vm371_vm0 = vmmov 0   ;;  %v372_v8 = vmov 0.0  }
   0x4   :  { %332 = vmatprep.subr.bf16.mxu1 %v370_v5  ;;  %v333_v6 = vpack.c.bf16 %v142_v3, %v141_v2  ;;  %v144_v7 = vld [vmem:[%s459_s2 + $0x18] sm:$0xff]  ;;  %323 = vmatprep.mubr.msk.f32.mxu1 %vm371_vm0, %v372_v8  ;;  %v62_v9 = vld [vmem:[%s458_s1] sm:$0xff]  ;;  %v63_v10 = vld [vmem:[%s458_s1 + $0x8] sm:$0xff] }
   0x5   :  { %326 = vmatprep.subr.bf16.mxu0 %v370_v5  ;;  %v64_v11 = vld [vmem:[%s458_s1 + $0x10] sm:$0xff]  ;;  %v65_v12 = vld [vmem:[%s458_s1 + $0x18] sm:$0xff]  ;;  %312 = vmatprep.mubr.msk.f32.mxu0 %vm371_vm0, %v372_v8  ;;  %v336_v13 = vpack.c.bf16 %v144_v7, %v143_v4  ;;  %v61_v14 = vld [vmem:[%s457_s0] sm:$0xff]  ;;  %v327_v15 = vpack.c.bf16 %v63_v10, %v62_v9 }
   0x6   :  { %334 = vmatpush3.bf16.msra.mxu1 %v333_v6 }
   0x7   :  { %15 = vsyncpa [#allocation5], 0  ;;  %335 = vmatprep.subr.bf16.mxu1 %v370_v5  ;;  %328 = vmatpush3.bf16.msra.mxu0 %v327_v15  ;;  %v330_v16 = vpack.c.bf16 %v65_v12, %v64_v11  ;;  %v140_v17 = vmul.f32 %v61_v14, %v61_v14  ;;  %vm66_vm1 = vcmask 261120   ;;  %v233_v25 = vld [vmem:[%s460_s3] sm:$0xff]  ;;  %vm254_vm2 = vcmask 7168   ;;  %s373_s3 = smov [#allocation4]  }
   0x8   :  { %329 = vmatprep.subr.bf16.mxu0 %v370_v5  ;;  %s274_s16 = sshll.u32 %s373_s3, 4  ;;  %s275_s16 = int_to_ptr.vmem [resolvable:$true] %s274_s16 }
   0x9   :  { %v292_v18 = vld [vmem:[#allocation2] ss:$0 sm:$0xff]  ;;  %v293_v26 = vld [vmem:[#allocation3] ss:$0 sm:$0xff]  ;;  %s346_s18 = scalar_lea.vmem %s275_s16, 128  ;;  %p351_p1 = scmp.lt.s32.totalorder %s275_s16, %s275_s16 }
   0xa   :  { %337 = vmatpush3.bf16.msra.mxu1 %v336_v13  ;;  %v241_v27 = vsub.f32 %v293_v26, %v233_v25  ;;  %p347_p0 = scmp.ne.s32.totalorder %s275_s16, %s346_s18  ;;  %p352_p2 = scmp.lt.s32.totalorder %s346_s18, %s346_s18 }
   0xb   :  { %331 = vmatpush3.bf16.msra.mxu0 %v330_v16 }
   0xc   :  { %v242_v28 = vand.u32 2147483647, %v241_v27  ;;  %p353_p3 = por %p352_p2, %p351_p1 }
   0xd   :  { %324 = vmatmul.mubr.msk.f32.vlgmr.msra.gmra.mrb[0].mxu1 %vm66_vm1, %v140_v17 }
   0xe   :  { %313 = vmatmul.mubr.msk.f32.vlgmr.msra.gmra.mrb[0].mxu0 %vm66_vm1, %v61_v14  ;;  %v243_v29 = vsub.f32 1.0, %v242_v28  ;;  %p354_p4 = pnand %p353_p3, %p347_p0 }
  0xe0   :  { %v214_v19 = vpop.f32.mrb[0].mxu1 }
  0xe1   :  { %v225_v20 = vmul.f32 %v292_v18, %v214_v19  ;;  %v325_v21 = vpop.f32.mrb[1].mxu1  ;;  %v136_v22 = vpop.f32.mrb[0].mxu0 }
  0xe2   :  { %v314_v24 = vpop.f32.mrb[1].mxu0 }
  0xe3   :  { %v226_v23 = vmax.f32 %v225_v20, 1e-16 }
  0xe5   :  { %344 = vrsqrt.f32 %v226_v23 }
  0xef   :  { %v345_v30 = vpop.eup %344 }
  0xf0   :  { %v228_v31 = vmul.f32 %v345_v30, %v136_v22 }
  0xf2   :  { %v244_v32 = vsub.f32 %v243_v29, %v228_v31 }
  0xf4   :  { %v245_v33 = vand.u32 2147483647, %v244_v32 }
  0xf6   :  { %v255_v34 = vsel %vm254_vm2, %v245_v33, 0.0 }
  0xf7   :  { %256 = vadd.xlane.f32.xlu0 %v255_v34 }
 0x184   :  { %v257_v35 = vpop.xlane.xlu0 %256 }
 0x185   :  { %v258_v36 = vrot.slane %v257_v35, 4 }
 0x187   :  { %v259_v37 = vadd.f32 %v258_v36, %v257_v35 }
 0x189   :  { %v260_v38 = vrot.slane %v259_v37, 2 }
 0x18b   :  { %v261_v39 = vadd.f32 %v260_v38, %v259_v37 }
 0x18d   :  { %v262_v40 = vrot.slane %v261_v39, 1 }
 0x18f   :  { %v263_v41 = vadd.f32 %v262_v40, %v261_v39 }
 0x191   :  { %338 = vpush %v263_v41 }
 0x1c2   :  { %s339_s17 = spop %338 }
 0x1c3   :  { %v265_v42 = vstv %s339_s17 }
 0x1c4   :  { %267 = vst [vmem:[#allocation4] sm:$0xff] %v265_v42 }
 0x1c5   :  { %357 = shalt.err (!%p354_p4)
}
 0x1c6   :  { %s358_s21 = scalar_lea.hbm %s462_s6, 128 }
 0x1c7   :  { %p359_p5 = scmp.ne.s32.totalorder %s462_s6, %s358_s21  ;;  %p362_p6 = scmp.lt.u32.totalorder %s358_s21, %s462_s6 }
 0x1c9   :  { %p364_p7 = pnand %p362_p6, %p359_p5 }
 0x1cb   :  { %367 = shalt.err (!%p364_p7)
}
 0x1cc   :  { %277 = dma.vmem_to_hbm [thread:$0]  %s275_s16, 128, %s462_s6, [#allocation5]  }
 0x1cd   :  { %368 = dma.done.wait [#allocation5], 128  }
 0x1ce   :  { %369 = vsyncadd [#allocation5], 4294967168 }
 0x1cf   :  { %281 = vsyncpa [#allocation5], 1 }

</bundles_post_ra>
